<compile_context>
chip_gen: v7x
topology: tpu7x:2x2x1
jax: 0.10.0
libtpu: 0.0.40
codegen_flags: <defaults>
</compile_context>

<pallas_src>
import jax
import jax.numpy as jnp
from jax.experimental import pallas as pl
from jax.experimental.pallas import tpu as pltpu

NEG_INF_FILL = -1000000000.0


def _masked_max_kernel(x_ref, m_ref, o_ref, acc_ref):
    # x_ref:   (TB, TS, Hp) activation tile (input dtype; DMA'd as-is)
    # m_ref:   (TB, TS, 1)  int32 attention-mask tile
    # o_ref:   (TB, Hp)     output tile (written on the last S step only)
    # acc_ref: (TB, Hp)     f32 running-max accumulator (persists across S steps)
    k = pl.program_id(1)

    @pl.when(k == 0)
    def _init():
        acc_ref[...] = jnp.full_like(acc_ref, NEG_INF_FILL)

    x = x_ref[...].astype(jnp.float32)          # widen in-register; DMA stays narrow
    m = m_ref[...]                              # int32, (TB, TS, 1)
    masked = jnp.where(m == 0, NEG_INF_FILL, x)  # broadcast over lanes
    acc_ref[...] = jnp.maximum(acc_ref[...], jnp.max(masked, axis=1))

    @pl.when(k == pl.num_programs(1) - 1)
    def _store():
        o_ref[...] = acc_ref[...].astype(o_ref.dtype)


def _choose_tiles(B, S, Hp, itemsize, target_bytes=4 << 20):
    """Pick (TB, TS) so one activation tile is ~target_bytes (<= v5e scoped VMEM
    once double-buffered) and block shapes satisfy the (8, 128) rule."""
    TB = B if B < 8 else 8
    bytes_per_seq_row = max(1, TB * Hp * itemsize)
    ts = max(8, (target_bytes // bytes_per_seq_row) // 8 * 8)
    TS = S if S <= ts else ts
    return TB, TS


def max_pooling(last_hidden_state: jax.Array, attention_mask: jax.Array) -> jax.Array:
    """Masked max pooling over the sequence dimension.

    last_hidden_state: [B, S, H] float array
    attention_mask:    [B, S] (int or float; nonzero means "keep")
    returns:           [B, H]
    """
    B, S, H = last_hidden_state.shape
    dtype = last_hidden_state.dtype
    itemsize = jnp.dtype(dtype).itemsize

    # Pad H to a lane-dense multiple of 128 (irrelevant for typical 768/1024/4096).
    Hp = pl.cdiv(H, 128) * 128

    TB, TS = _choose_tiles(B, S, Hp, itemsize)
    Bp = pl.cdiv(B, TB) * TB
    Sp = pl.cdiv(S, TS) * TS

    x = last_hidden_state
    mask = attention_mask.astype(jnp.int32)     # keep mask integral; no float cast

    if (Bp, Sp, Hp) != (B, S, H):
        x = jnp.pad(x, ((0, Bp - B), (0, Sp - S), (0, Hp - H)))
    if (Bp, Sp) != (B, S):
        mask = jnp.pad(mask, ((0, Bp - B), (0, Sp - S)))  # padded positions -> mask 0
    mask3 = mask.reshape(Bp, Sp, 1)

    grid = (Bp // TB, Sp // TS)

    out = pl.pallas_call(
        _masked_max_kernel,
        out_shape=jax.ShapeDtypeStruct((Bp, Hp), dtype),
        grid=grid,
        in_specs=[
            pl.BlockSpec((TB, TS, Hp), lambda b, k: (b, k, 0)),
            pl.BlockSpec((TB, TS, 1), lambda b, k: (b, k, 0)),
        ],
        out_specs=pl.BlockSpec((TB, Hp), lambda b, k: (b, 0)),
        scratch_shapes=[pltpu.VMEM((TB, Hp), jnp.float32)],
        compiler_params=pltpu.CompilerParams(
            dimension_semantics=("parallel", "arbitrary"),
        ),
    )(x, mask3)

    return out[:B, :H]


if __name__ == "__main__":
    # MaxPooling has no learnable parameters (trainable = False); only the
    # forward reduction is implemented.
    key = jax.random.PRNGKey(0)
    B, S, H = 2, 8, 32

    k_x, _ = jax.random.split(key)
    last_hidden_state = jax.random.normal(k_x, (B, S, H), dtype=jnp.float32)

    # Deterministic attention mask: batch 0 fully valid, batch 1 half padded.
    attention_mask = jnp.stack(
        [
            jnp.ones((S,), dtype=jnp.int32),
            jnp.concatenate(
                [jnp.ones((S // 2,), dtype=jnp.int32),
                 jnp.zeros((S - S // 2,), dtype=jnp.int32)]
            ),
        ],
        axis=0,
    )

    result = max_pooling(last_hidden_state, attention_mask)
    result = jax.block_until_ready(result)

    # Reference (plain JAX) check of the PyTorch semantics.
    ref_masked = jnp.where(
        attention_mask[:, :, None] == 0,
        jnp.full_like(last_hidden_state, NEG_INF_FILL),
        last_hidden_state,
    )
    ref = jnp.max(ref_masked, axis=1)
    assert result.shape == (B, H)
    assert jnp.allclose(result, ref, atol=1e-6), "Pallas result mismatch vs reference"

    print("KERNEL_OK")
</pallas_src>

<mosaic_0001>
module attributes {stable_mosaic.version = 11 : i64} {
  func.func @_masked_max_kernel(%arg0: i32, %arg1: i32, %arg2: memref<2x8x128xf32, #tpu.memory_space<vmem>>, %arg3: memref<2x8x1xi32, #tpu.memory_space<vmem>>, %arg4: memref<2x128xf32, #tpu.memory_space<vmem>>, %arg5: memref<2x128xf32, #tpu.memory_space<vmem>>) attributes {dimension_semantics = [#tpu.dimension_semantics<parallel>, #tpu.dimension_semantics<arbitrary>], iteration_bounds = array<i64: 1, 1>, scalar_prefetch = 0 : i64, scratch_operands = 1 : i64, tpu.core_type = #tpu.core_type<tc>, window_params = [{transform_indices = @transform_0, window_bounds = array<i64: 2, 8, 128>}, {transform_indices = @transform_1, window_bounds = array<i64: 2, 8, 1>}, {transform_indices = @transform_2, window_bounds = array<i64: 2, 128>}]} {
    %c0_i32 = arith.constant 0 : i32
    %0 = arith.cmpi eq, %arg1, %c0_i32 : i32
    %1 = arith.extui %0 : i1 to i32
    %c0_i32_0 = arith.constant 0 : i32
    %2 = arith.cmpi ne, %1, %c0_i32_0 : i32
    scf.if %2 {
      %cst_14 = arith.constant -1.000000e+09 : f32
      %18 = vector.broadcast %cst_14 : f32 to vector<2x128xf32>
      %c0_15 = arith.constant 0 : index
      %c0_16 = arith.constant 0 : index
      %19 = vector.load %arg5[%c0_15, %c0_16] : memref<2x128xf32, #tpu.memory_space<vmem>>, vector<2x128xf32>
      tpu.vector_store %arg5[%c0_15, %c0_16], %18 {strides = array<i32>} : memref<2x128xf32, #tpu.memory_space<vmem>>, vector<2x128xf32>,
    } else {
    }
    %c0 = arith.constant 0 : index
    %c0_1 = arith.constant 0 : index
    %c0_2 = arith.constant 0 : index
    %3 = vector.load %arg2[%c0, %c0_1, %c0_2] : memref<2x8x128xf32, #tpu.memory_space<vmem>>, vector<2x8x128xf32>
    %c0_3 = arith.constant 0 : index
    %c0_4 = arith.constant 0 : index
    %c0_5 = arith.constant 0 : index
    %4 = vector.load %arg3[%c0_3, %c0_4, %c0_5] : memref<2x8x1xi32, #tpu.memory_space<vmem>>, vector<2x8x1xi32>
    %c0_i32_6 = arith.constant 0 : i32
    %5 = vector.broadcast %c0_i32_6 : i32 to vector<2x8x1xi32>
    %6 = arith.cmpi eq, %4, %5 : vector<2x8x1xi32>
    %cst = arith.constant -1.000000e+09 : f32
    %7 = vector.shape_cast %6 : vector<2x8x1xi1> to vector<2x8x1xi1>
    %8 = vector.broadcast %7 : vector<2x8x1xi1> to vector<2x8x128xi1>
    %9 = vector.broadcast %cst : f32 to vector<2x8x128xf32>
    %10 = arith.select %8, %9, %3 : vector<2x8x128xi1>, vector<2x8x128xf32>
    %c0_7 = arith.constant 0 : index
    %c0_8 = arith.constant 0 : index
    %11 = vector.load %arg5[%c0_7, %c0_8] : memref<2x128xf32, #tpu.memory_space<vmem>>, vector<2x128xf32>
    %cst_9 = arith.constant dense<0xFF800000> : vector<2x128xf32>
    %12 = vector.multi_reduction <maximumf>, %10, %cst_9 [1] : vector<2x8x128xf32> to vector<2x128xf32>
    %13 = arith.maximumf %11, %12 : vector<2x128xf32>
    %c0_10 = arith.constant 0 : index
    %c0_11 = arith.constant 0 : index
    %14 = vector.load %arg5[%c0_10, %c0_11] : memref<2x128xf32, #tpu.memory_space<vmem>>, vector<2x128xf32>
    tpu.vector_store %arg5[%c0_10, %c0_11], %13 {strides = array<i32>} : memref<2x128xf32, #tpu.memory_space<vmem>>, vector<2x128xf32>,
    %c0_i32_12 = arith.constant 0 : i32
    %15 = arith.cmpi eq, %arg1, %c0_i32_12 : i32
    %16 = arith.extui %15 : i1 to i32
    %c0_i32_13 = arith.constant 0 : i32
    %17 = arith.cmpi ne, %16, %c0_i32_13 : i32
    scf.if %17 {
      %c0_14 = arith.constant 0 : index
      %c0_15 = arith.constant 0 : index
      %18 = vector.load %arg5[%c0_14, %c0_15] : memref<2x128xf32, #tpu.memory_space<vmem>>, vector<2x128xf32>
      %c0_16 = arith.constant 0 : index
      %c0_17 = arith.constant 0 : index
      %19 = vector.load %arg4[%c0_16, %c0_17] : memref<2x128xf32, #tpu.memory_space<vmem>>, vector<2x128xf32>
      tpu.vector_store %arg4[%c0_16, %c0_17], %18 {strides = array<i32>} : memref<2x128xf32, #tpu.memory_space<vmem>>, vector<2x128xf32>,
    } else {
    }
    return
  }
  func.func @transform_0(%arg0: i32, %arg1: i32) -> (i32, i32, i32) {
    %c0_i32 = arith.constant 0 : i32
    %c0_i32_0 = arith.constant 0 : i32
    return %arg0, %arg1, %c0_i32 : i32, i32, i32
  }
  func.func @transform_1(%arg0: i32, %arg1: i32) -> (i32, i32, i32) {
    %c0_i32 = arith.constant 0 : i32
    %c0_i32_0 = arith.constant 0 : i32
    return %arg0, %arg1, %c0_i32 : i32, i32, i32
  }
  func.func @transform_2(%arg0: i32, %arg1: i32) -> (i32, i32) {
    %c0_i32 = arith.constant 0 : i32
    %c0_i32_0 = arith.constant 0 : i32
    return %arg0, %c0_i32 : i32, i32
  }
}

</mosaic_0001>

<bundles_post_ra>
// kernel: tpu_custom_call.1
= control target key start
LH: loop header
LB: loop body
LE: loop exit
PB: predicated region body
PF: predicated region fallthrough
CT: control target
= control target key end

     0   :  { %s144_s0 = inlined_call_operand.vmem [shape: f32[2,8,128], index: 0, kind: input, shape index: {}]   ;;  %s145_s1 = inlined_call_operand.vmem [shape: s32[2,8,1], index: 1, kind: input, shape index: {}]   ;;  %s146_s2 = inlined_call_operand.hbm [shape: f32[2,128], index: 2, kind: output, shape index: {}]  }
   0x1   :  { %v19_v0 = vld [vmem:[%s145_s1] sm:$0xff]  ;;  %v20_v1 = vld [vmem:[%s145_s1 + $0x8] sm:$0xff] }
   0x2   :  { %7 = vsyncpa [#allocation4], 0  ;;  %v102_v2 = vmov 0   ;;  %vm21_vm0 = vcmp.eq.s32.totalorder %v19_v0, 0  ;;  %vm22_vm1 = vcmp.eq.s32.totalorder %v20_v1, 0  ;;  %v17_v6 = vld [vmem:[%s144_s0] sm:$0xff] }
   0x3   :  { %77 = vset.pattern.permute.xlu0 %v102_v2  ;;  %v23_v3 = vsel %vm21_vm0, 1, %v102_v2  ;;  %v24_v4 = vsel %vm22_vm1, 1, %v102_v2  ;;  %v103_v5 = vmov -1e+09   ;;  %v18_v10 = vld [vmem:[%s144_s0 + $0x8] sm:$0xff]  ;;  %vm50_vm4 = vcmask 1041409  }
   0x4   :  { %26 = vperm.xlu0 %77, %v23_v3   ;;  %16 = vst [vmem:[#allocation2] sm:$0x3] %v103_v5  ;;  %s104_s0 = smov [#allocation3]  }
   0x5   :  { %s66_s16 = sshll.u32 %s104_s0, 4  ;;  %s67_s16 = int_to_ptr.vmem [resolvable:$true] %s66_s16 }
   0x6   :  { %s78_s17 = scalar_lea.vmem %s67_s16, 32  ;;  %p83_p1 = scmp.lt.s32.totalorder %s67_s16, %s67_s16 }
   0x7   :  { %p79_p0 = scmp.ne.s32.totalorder %s67_s16, %s78_s17  ;;  %p84_p2 = scmp.lt.s32.totalorder %s78_s17, %s78_s17 }
   0x8   :  { %29 = vperm.xlu0 %77, %v24_v4  }
   0x9   :  { %p85_p3 = por %p84_p2, %p83_p1 }
   0xb   :  { %v35_v23 = vld [vmem:[#allocation2] sm:$0x3]  ;;  %p86_p4 = pnand %p85_p3, %p79_p0 }
  0x83   :  { %v27_v7 = vpop.permute.xlu0 %26 }
  0x84   :  { %vm31_vm2 = vcmp.eq.s32.totalorder %v27_v7, 1 }
  0x85   :  { %v33_v8 = vsel %vm31_vm2, -1e+09, %v17_v6 }
  0x86   :  { %v36_v9 = vrot.slane %v33_v8, 4 }
  0x87   :  { %v30_v11 = vpop.permute.xlu0 %29 }
  0x88   :  { %v37_v12 = vmax.f32 %v33_v8, %v36_v9  ;;  %vm32_vm3 = vcmp.eq.s32.totalorder %v30_v11, 1 }
  0x89   :  { %v34_v13 = vsel %vm32_vm3, -1e+09, %v18_v10 }
  0x8a   :  { %v38_v14 = vrot.slane %v37_v12, 2  ;;  %v42_v15 = vrot.slane %v34_v13, 4 }
  0x8c   :  { %v39_v16 = vmax.f32 %v37_v12, %v38_v14  ;;  %v43_v17 = vmax.f32 %v34_v13, %v42_v15 }
  0x8e   :  { %v44_v18 = vrot.slane %v43_v17, 2  ;;  %v40_v19 = vrot.slane %v39_v16, 1 }
  0x90   :  { %v45_v20 = vmax.f32 %v43_v17, %v44_v18  ;;  %v41_v22 = vmax.f32 %v39_v16, %v40_v19 }
  0x92   :  { %v46_v21 = vrot.slane %v45_v20, 1 }
  0x94   :  { %v47_v24 = vmax.f32 %v45_v20, %v46_v21 }
  0x96   :  { %v51_v25 = vsel %vm50_vm4, %v47_v24, %v41_v22 }
  0x97   :  { %v53_v26 = vmax.f32 %v35_v23, %v51_v25 }
  0x99   :  { %54 = vst [vmem:[#allocation2] sm:$0x3] %v53_v26 }
  0xa0   :  { %v58_v27 = vld [vmem:[#allocation2] sm:$0x3] }
  0xa1   :  { %59 = vst [vmem:[#allocation3] sm:$0x3] %v58_v27 }
  0xa2   :  { %89 = shalt.err (!%p86_p4)
}
  0xa3   :  { %s90_s20 = scalar_lea.hbm %s146_s2, 32 }
  0xa4   :  { %p91_p5 = scmp.ne.s32.totalorder %s146_s2, %s90_s20  ;;  %p94_p6 = scmp.lt.u32.totalorder %s90_s20, %s146_s2 }
  0xa6   :  { %p96_p7 = pnand %p94_p6, %p91_p5 }
  0xa8   :  { %99 = shalt.err (!%p96_p7)
}
  0xa9   :  { %69 = dma.vmem_to_hbm [thread:$0]  %s67_s16, 32, %s146_s2, [#allocation4]  }
  0xaa   :  { %100 = dma.done.wait [#allocation4], 32  }
  0xab   :  { %101 = vsyncadd [#allocation4], 4294967264 }
  0xac   :  { %73 = vsyncpa [#allocation4], 1 }

</bundles_post_ra>
